<compile_context>
chip_gen: v7x
topology: tpu7x:2x2x1
jax: 0.10.0
libtpu: 0.0.40
codegen_flags: <defaults>
</compile_context>

<pallas_src>
import functools

import jax
import jax.numpy as jnp
from jax import lax
from jax.experimental import pallas as pl
from jax.experimental.pallas import tpu as pltpu

K = 7      # conv kernel size
PAD = 3    # spatial padding
LEAD = 8   # zero sublane rows above the first stripe (>= PAD, 8-aligned)
TAIL = 8   # zero sublane rows past the last stripe (keeps shifted slices in bounds)


def _round_up(v, m):
    return -(-v // m) * m


def _build_toeplitz(conv_weight, W, G, C):
    """(1,2,7,7) conv weight -> (2*K, G*W, G*W) block-diagonal banded matrices.

    Per block (kw padding absorbed): T_c,kh[w_in, w_out] =
    wt[0, c, kh, w_in - w_out + PAD] when 0 <= w_in - w_out + PAD < K, else 0,
    so `row @ T` performs the kw direction of the 7x7 conv (with zero padding)
    for row-offset kh of input channel c (c=0: avg -- its taps carry the 1/C
    mean scale; c=1: max).  G identical diagonal blocks keep the G lane-packed
    images independent.
    """
    w_in = jnp.arange(W)[:, None]
    w_out = jnp.arange(W)[None, :]
    kw = w_in - w_out + PAD
    valid = (kw >= 0) & (kw < K)
    kw_c = jnp.clip(kw, 0, K - 1)
    mats = []
    for c in range(2):                                   # 0: avg channel, 1: max channel
        scale = (1.0 / C) if c == 0 else 1.0
        for kh in range(K):
            taps = conv_weight[0, c, kh].astype(jnp.float32) * scale   # (K,)
            mats.append(jnp.where(valid, taps[kw_c], jnp.float32(0.0)))
    t = jnp.stack(mats)                                  # (2K, W, W) f32
    if G > 1:
        eye = jnp.eye(G, dtype=jnp.float32)
        t = (eye[None, :, None, :, None] * t[:, None, :, None, :]
             ).reshape(2 * K, G * W, G * W)
    return t


def _choose_tiling(N, C, H, W, in_itemsize, out_itemsize):
    """Pick (G, bn_r, SH, vmem_limit): lane-group size, sublane stripes per grid
    step, stripe height, and an explicit scoped-VMEM limit."""
    max_g = max(1, 128 // W)
    G = max(d for d in range(1, min(N, max_g) + 1) if N % d == 0)
    GW = G * W
    SH = _round_up(H + 2 * PAD, 8)
    NG = N // G

    lanes_w = _round_up(W, 128)
    lanes_gw = _round_up(GW, 128)
    sub_h = _round_up(H, 8)

    def vmem_estimate(bn_r):
        bn = bn_r * G
        rs = LEAD + bn_r * SH + TAIL
        x_blk = 2 * bn * C * sub_h * lanes_w * in_itemsize        # input, double-buffered
        o_blk = 2 * bn_r * sub_h * lanes_gw * out_itemsize        # output, double-buffered
        t_blk = 2 * (2 * K) * _round_up(GW, 8) * lanes_gw * 4     # Toeplitz, both buffers
        scr = 2 * rs * lanes_gw * 4                               # avg/max packed scratch
        live = 6 * _round_up(bn_r * SH, 8) * lanes_gw * 4         # acc chains / lhs slices
        return x_blk + o_blk + t_blk + scr + live

    cap = 64 << 20                                                # conservative (v7x) default
    try:
        cap = int(pltpu.get_tpu_info().vmem_capacity_bytes)
    except Exception:
        pass
    budget = min(cap // 4, 24 << 20)      # ~16 MiB on v7x (64 MiB VMEM), 24 MiB on v5e/v6e

    bn_r_cap = max(1, 128 // SH)          # keep the two f32 accumulator chains in vregs
    divisors = [d for d in range(1, NG + 1) if NG % d == 0 and d <= bn_r_cap]
    fitting = [d for d in divisors if vmem_estimate(d) <= budget] or [1]

    def steps(d):
        return NG // d

    even_multi = [d for d in fitting if steps(d) >= 2 and steps(d) % 2 == 0]  # v7x: 2 TCs
    multi = [d for d in fitting if steps(d) >= 2]
    bn_r = max(even_multi or multi or fitting)

    est = vmem_estimate(bn_r)
    vmem_limit = int(min(max(int(est * 1.5), 16 << 20), max(cap - (4 << 20), 16 << 20)))
    return G, bn_r, SH, vmem_limit


def _spatial_attention_kernel(t_ref, x_ref, o_ref, s_avg, s_mx,
                              *, C, H, W, G, bn_r, SH):
    # t_ref : VMEM (2K, G*W, G*W) f32   block-diag banded Toeplitz (avg rows, then max)
    # x_ref : VMEM (bn_r*G, C, H, W)    raw (unpadded) input block
    # o_ref : VMEM (bn_r, H, G*W)       lane-packed sigmoid(conv) output block
    # s_avg, s_mx : VMEM (LEAD + bn_r*SH + TAIL, G*W) f32 packed planes with zero borders
    f32 = jnp.float32
    M = bn_r * SH

    # Zero the scratches every step: the gap/pad rows provide the conv's kh
    # zero-padding, and re-zeroing per step keeps megacore grid splits correct.
    s_avg[...] = jnp.zeros_like(s_avg)
    s_mx[...] = jnp.zeros_like(s_mx)

    # Streaming channel sum / max, packed G images per lane group and bn_r
    # sublane stripes.  The heavy math (the conv itself) is hoisted out of
    # this loop onto the MXU below, so the fori body stays tiny.
    def stripe_body(r, carry):
        avg_parts, mx_parts = [], []
        for g in range(G):                               # static lane-group offset
            idx = r * G + g
            p0 = x_ref[idx, 0].astype(f32)
            if C > 1:
                def chan_body(c, sm, _idx=idx):
                    s, m = sm
                    p = x_ref[_idx, c].astype(f32)
                    return s + p, jnp.maximum(m, p)
                s, m = lax.fori_loop(1, C, chan_body, (p0, p0))
            else:
                s, m = p0, p0
            avg_parts.append(s)                          # 1/C is folded into the Toeplitz
            mx_parts.append(m)
        row0 = pl.multiple_of(LEAD + r * SH, 8)
        s_avg[pl.ds(row0, H), :] = jnp.concatenate(avg_parts, axis=-1)
        s_mx[pl.ds(row0, H), :] = jnp.concatenate(mx_parts, axis=-1)
        return carry

    lax.fori_loop(0, bn_r, stripe_body, 0)

    # 7x7 conv as 14 banded block-diagonal Toeplitz MXU matmuls over all
    # packed images at once.  Weights are sliced per use; the avg and max
    # accumulation chains are independent.
    shift = LEAD - PAD
    acc_a = jnp.dot(s_avg[shift:shift + M, :], t_ref[0],
                    preferred_element_type=f32)
    acc_m = jnp.dot(s_mx[shift:shift + M, :], t_ref[K],
                    preferred_element_type=f32)
    for kh in range(1, K):
        acc_a = acc_a + jnp.dot(s_avg[shift + kh:shift + kh + M, :], t_ref[kh],
                                preferred_element_type=f32)
        acc_m = acc_m + jnp.dot(s_mx[shift + kh:shift + kh + M, :], t_ref[K + kh],
                                preferred_element_type=f32)
    acc = acc_a + acc_m

    # Lane-dense stores of the H valid rows of every stripe (gap rows skipped).
    for r in range(bn_r):
        o_ref[r] = jax.nn.sigmoid(acc[r * SH:r * SH + H, :]).astype(o_ref.dtype)


def spatial_attention(x, conv_weight):
    """x: (N, C, H, W); conv_weight: (1, 2, 7, 7) -> (N, 1, H, W)."""
    N, C, H, W = x.shape
    out_dtype = x.dtype
    G, bn_r, SH, vmem_limit = _choose_tiling(
        N, C, H, W, jnp.dtype(x.dtype).itemsize, jnp.dtype(out_dtype).itemsize)
    GW = G * W
    bn = bn_r * G
    RS = LEAD + bn_r * SH + TAIL
    num_steps = N // bn

    toeplitz = _build_toeplitz(conv_weight, W, G, C)      # (2K, GW, GW) f32

    kernel = functools.partial(_spatial_attention_kernel,
                               C=C, H=H, W=W, G=G, bn_r=bn_r, SH=SH)

    packed = pl.pallas_call(
        kernel,
        out_shape=jax.ShapeDtypeStruct((N // G, H, GW), out_dtype),
        grid_spec=pltpu.PrefetchScalarGridSpec(
            num_scalar_prefetch=0,
            grid=(num_steps,),
            in_specs=[
                # Constant block-diag Toeplitz: never re-DMA'd across steps.
                pl.BlockSpec((2 * K, GW, GW), lambda n: (0, 0, 0)),
                # Raw (unpadded) input, a block of bn_r*G images per step.
                pl.BlockSpec((bn, C, H, W), lambda n: (n, 0, 0, 0)),
            ],
            out_specs=pl.BlockSpec((bn_r, H, GW), lambda n: (n, 0, 0)),
            scratch_shapes=[pltpu.VMEM((RS, GW), jnp.float32),
                            pltpu.VMEM((RS, GW), jnp.float32)],
        ),
        compiler_params=pltpu.CompilerParams(
            dimension_semantics=("parallel",),
            vmem_limit_bytes=vmem_limit,
        ),
    )(toeplitz, x)

    # Un-pack the G lane-packed images (touches only the output tensor, 1/C of
    # the input bytes).
    out = packed.reshape(N // G, H, G, W).transpose(0, 2, 1, 3)
    return out.reshape(N, 1, H, W)


def _reference(x, conv_weight):
    avg = jnp.mean(x, axis=1, keepdims=True)
    mx = jnp.max(x, axis=1, keepdims=True)
    cat = jnp.concatenate([avg, mx], axis=1)
    y = lax.conv_general_dilated(
        cat, conv_weight, window_strides=(1, 1),
        padding=((PAD, PAD), (PAD, PAD)),
        dimension_numbers=("NCHW", "OIHW", "NCHW"))
    return jax.nn.sigmoid(y)


if __name__ == "__main__":
    key = jax.random.PRNGKey(0)
    k_x, k_w = jax.random.split(key)

    N, C, H, W = 2, 4, 16, 16
    x = jax.random.normal(k_x, (N, C, H, W), dtype=jnp.float32)
    # Deterministic synthetic conv weight, shape (out=1, in=2, 7, 7), no bias.
    conv_weight = jax.random.normal(k_w, (1, 2, K, K), dtype=jnp.float32) * 0.1

    out = jax.block_until_ready(spatial_attention(x, conv_weight))
    ref = _reference(x, conv_weight)

    assert out.shape == (N, 1, H, W)
    err = float(jnp.max(jnp.abs(out - ref)))
    assert jnp.allclose(out, ref, atol=2e-3, rtol=2e-3), f"max abs err {err}"
    print("KERNEL_OK")
</pallas_src>

<mosaic_0001>
module attributes {stable_mosaic.version = 11 : i64} {
  func.func @_spatial_attention_kernel(%arg0: i32, %arg1: memref<14x32x32xf32, #tpu.memory_space<vmem>>, %arg2: memref<2x4x16x16xf32, #tpu.memory_space<vmem>>, %arg3: memref<1x16x32xf32, #tpu.memory_space<vmem>>, %arg4: memref<40x32xf32, #tpu.memory_space<vmem>>, %arg5: memref<40x32xf32, #tpu.memory_space<vmem>>) attributes {dimension_semantics = [#tpu.dimension_semantics<parallel>], iteration_bounds = array<i64: 1>, scalar_prefetch = 0 : i64, scratch_operands = 2 : i64, tpu.core_type = #tpu.core_type<tc>, window_params = [{pipeline_mode = #tpu.pipeline_mode<synchronous>, transform_indices = @transform_0, window_bounds = array<i64: 14, 32, 32>}, {transform_indices = @transform_1, window_bounds = array<i64: 2, 4, 16, 16>}, {transform_indices = @transform_2, window_bounds = array<i64: 1, 16, 32>}]} {
    %cst = arith.constant 0.000000e+00 : f32
    %0 = vector.broadcast %cst : f32 to vector<40x32xf32>
    %c0 = arith.constant 0 : index
    %c0_0 = arith.constant 0 : index
    %1 = vector.load %arg4[%c0, %c0_0] : memref<40x32xf32, #tpu.memory_space<vmem>>, vector<40x32xf32>
    tpu.vector_store %arg4[%c0, %c0_0], %0 {strides = array<i32>} : memref<40x32xf32, #tpu.memory_space<vmem>>, vector<40x32xf32>,
    %cst_1 = arith.constant 0.000000e+00 : f32
    %2 = vector.broadcast %cst_1 : f32 to vector<40x32xf32>
    %c0_2 = arith.constant 0 : index
    %c0_3 = arith.constant 0 : index
    %3 = vector.load %arg5[%c0_2, %c0_3] : memref<40x32xf32, #tpu.memory_space<vmem>>, vector<40x32xf32>
    tpu.vector_store %arg5[%c0_2, %c0_3], %2 {strides = array<i32>} : memref<40x32xf32, #tpu.memory_space<vmem>>, vector<40x32xf32>,
    %c0_i32 = arith.constant 0 : i32
    %c2_i32 = arith.constant 2 : i32
    %4 = arith.muli %c0_i32, %c2_i32 : i32
    %c0_i32_4 = arith.constant 0 : i32
    %5 = arith.addi %4, %c0_i32_4 : i32
    %6 = arith.index_cast %5 : i32 to index
    %c0_5 = arith.constant 0 : index
    %c0_6 = arith.constant 0 : index
    %c0_7 = arith.constant 0 : index
    %7 = vector.load %arg2[%6, %c0_5, %c0_6, %c0_7] : memref<2x4x16x16xf32, #tpu.memory_space<vmem>>, vector<1x1x16x16xf32>
    %8 = vector.shape_cast %7 : vector<1x1x16x16xf32> to vector<16x16xf32>
    %c1_i32 = arith.constant 1 : i32
    %c3_i32 = arith.constant 3 : i32
    %9 = arith.addi %c1_i32, %c3_i32 : i32
    %c1_i32_8 = arith.constant 1 : i32
    %10:2 = scf.for %arg6 = %c1_i32 to %9 step %c1_i32_8 iter_args(%arg7 = %8, %arg8 = %8) -> (vector<16x16xf32>, vector<16x16xf32>)  : i32 {
      %105 = arith.index_cast %5 : i32 to index
      %106 = arith.index_cast %arg6 : i32 to index
      %c0_97 = arith.constant 0 : index
      %c0_98 = arith.constant 0 : index
      %107 = vector.load %arg2[%105, %106, %c0_97, %c0_98] : memref<2x4x16x16xf32, #tpu.memory_space<vmem>>, vector<1x1x16x16xf32>
      %108 = vector.shape_cast %107 : vector<1x1x16x16xf32> to vector<16x16xf32>
      %109 = arith.addf %arg7, %108 : vector<16x16xf32>
      %110 = arith.maximumf %arg8, %108 : vector<16x16xf32>
      scf.yield %109, %110 : vector<16x16xf32>, vector<16x16xf32>
    }
    %c3_i32_9 = arith.constant 3 : i32
    %c2_i32_10 = arith.constant 2 : i32
    %11 = arith.muli %c0_i32, %c2_i32_10 : i32
    %c1_i32_11 = arith.constant 1 : i32
    %12 = arith.addi %11, %c1_i32_11 : i32
    %13 = arith.index_cast %12 : i32 to index
    %c0_12 = arith.constant 0 : index
    %c0_13 = arith.constant 0 : index
    %c0_14 = arith.constant 0 : index
    %14 = vector.load %arg2[%13, %c0_12, %c0_13, %c0_14] : memref<2x4x16x16xf32, #tpu.memory_space<vmem>>, vector<1x1x16x16xf32>
    %15 = vector.shape_cast %14 : vector<1x1x16x16xf32> to vector<16x16xf32>
    %c1_i32_15 = arith.constant 1 : i32
    %c3_i32_16 = arith.constant 3 : i32
    %16 = arith.addi %c1_i32_15, %c3_i32_16 : i32
    %c1_i32_17 = arith.constant 1 : i32
    %17:2 = scf.for %arg6 = %c1_i32_15 to %16 step %c1_i32_17 iter_args(%arg7 = %15, %arg8 = %15) -> (vector<16x16xf32>, vector<16x16xf32>)  : i32 {
      %105 = arith.index_cast %12 : i32 to index
      %106 = arith.index_cast %arg6 : i32 to index
      %c0_97 = arith.constant 0 : index
      %c0_98 = arith.constant 0 : index
      %107 = vector.load %arg2[%105, %106, %c0_97, %c0_98] : memref<2x4x16x16xf32, #tpu.memory_space<vmem>>, vector<1x1x16x16xf32>
      %108 = vector.shape_cast %107 : vector<1x1x16x16xf32> to vector<16x16xf32>
      %109 = arith.addf %arg7, %108 : vector<16x16xf32>
      %110 = arith.maximumf %arg8, %108 : vector<16x16xf32>
      scf.yield %109, %110 : vector<16x16xf32>, vector<16x16xf32>
    }
    %c3_i32_18 = arith.constant 3 : i32
    %c24_i32 = arith.constant 24 : i32
    %18 = arith.muli %c0_i32, %c24_i32 : i32
    %c8_i32 = arith.constant 8 : i32
    %19 = arith.addi %c8_i32, %18 : i32
    %20 = tpu.assume_multiple %19, 8 : i32
    %21 = tpu.concatenate %10#0, %17#0 in 1 : vector<16x16xf32>, vector<16x16xf32> -> vector<16x32xf32>
    %22 = arith.index_cast %20 : i32 to index
    %c0_19 = arith.constant 0 : index
    %23 = vector.load %arg4[%22, %c0_19] : memref<40x32xf32, #tpu.memory_space<vmem>>, vector<16x32xf32>
    tpu.vector_store %arg4[%22, %c0_19], %21 {strides = array<i32>} : memref<40x32xf32, #tpu.memory_space<vmem>>, vector<16x32xf32>,
    %24 = tpu.concatenate %10#1, %17#1 in 1 : vector<16x16xf32>, vector<16x16xf32> -> vector<16x32xf32>
    %25 = arith.index_cast %20 : i32 to index
    %c0_20 = arith.constant 0 : index
    %26 = vector.load %arg5[%25, %c0_20] : memref<40x32xf32, #tpu.memory_space<vmem>>, vector<16x32xf32>
    tpu.vector_store %arg5[%25, %c0_20], %24 {strides = array<i32>} : memref<40x32xf32, #tpu.memory_space<vmem>>, vector<16x32xf32>,
    %c1_i32_21 = arith.constant 1 : i32
    %c5 = arith.constant 5 : index
    %c0_22 = arith.constant 0 : index
    %27 = vector.load %arg4[%c5, %c0_22] : memref<40x32xf32, #tpu.memory_space<vmem>>, vector<24x32xf32>
    %c0_23 = arith.constant 0 : index
    %c0_24 = arith.constant 0 : index
    %c0_25 = arith.constant 0 : index
    %28 = vector.load %arg1[%c0_23, %c0_24, %c0_25] : memref<14x32x32xf32, #tpu.memory_space<vmem>>, vector<1x32x32xf32>
    %29 = vector.shape_cast %28 : vector<1x32x32xf32> to vector<32x32xf32>
    %cst_26 = arith.constant dense<0.000000e+00> : vector<24x32xf32>
    %30 = tpu.matmul %27, %29, %cst_26 {dimension_numbers = #tpu.dot_dimension_numbers<[1], [0], [0], [1], [0, 0, 1, 1], [], []>} : vector<24x32xf32>, vector<32x32xf32>, vector<24x32xf32> -> vector<24x32xf32>
    %c5_27 = arith.constant 5 : index
    %c0_28 = arith.constant 0 : index
    %31 = vector.load %arg5[%c5_27, %c0_28] : memref<40x32xf32, #tpu.memory_space<vmem>>, vector<24x32xf32>
    %c7 = arith.constant 7 : index
    %c0_29 = arith.constant 0 : index
    %c0_30 = arith.constant 0 : index
    %32 = vector.load %arg1[%c7, %c0_29, %c0_30] : memref<14x32x32xf32, #tpu.memory_space<vmem>>, vector<1x32x32xf32>
    %33 = vector.shape_cast %32 : vector<1x32x32xf32> to vector<32x32xf32>
    %cst_31 = arith.constant dense<0.000000e+00> : vector<24x32xf32>
    %34 = tpu.matmul %31, %33, %cst_31 {dimension_numbers = #tpu.dot_dimension_numbers<[1], [0], [0], [1], [0, 0, 1, 1], [], []>} : vector<24x32xf32>, vector<32x32xf32>, vector<24x32xf32> -> vector<24x32xf32>
    %c6 = arith.constant 6 : index
    %c0_32 = arith.constant 0 : index
    %35 = vector.load %arg4[%c6, %c0_32] : memref<40x32xf32, #tpu.memory_space<vmem>>, vector<24x32xf32>
    %c1 = arith.constant 1 : index
    %c0_33 = arith.constant 0 : index
    %c0_34 = arith.constant 0 : index
    %36 = vector.load %arg1[%c1, %c0_33, %c0_34] : memref<14x32x32xf32, #tpu.memory_space<vmem>>, vector<1x32x32xf32>
    %37 = vector.shape_cast %36 : vector<1x32x32xf32> to vector<32x32xf32>
    %cst_35 = arith.constant dense<0.000000e+00> : vector<24x32xf32>
    %38 = tpu.matmul %35, %37, %cst_35 {dimension_numbers = #tpu.dot_dimension_numbers<[1], [0], [0], [1], [0, 0, 1, 1], [], []>} : vector<24x32xf32>, vector<32x32xf32>, vector<24x32xf32> -> vector<24x32xf32>
    %39 = arith.addf %30, %38 : vector<24x32xf32>
    %c6_36 = arith.constant 6 : index
    %c0_37 = arith.constant 0 : index
    %40 = vector.load %arg5[%c6_36, %c0_37] : memref<40x32xf32, #tpu.memory_space<vmem>>, vector<24x32xf32>
    %c8 = arith.constant 8 : index
    %c0_38 = arith.constant 0 : index
    %c0_39 = arith.constant 0 : index
    %41 = vector.load %arg1[%c8, %c0_38, %c0_39] : memref<14x32x32xf32, #tpu.memory_space<vmem>>, vector<1x32x32xf32>
    %42 = vector.shape_cast %41 : vector<1x32x32xf32> to vector<32x32xf32>
    %cst_40 = arith.constant dense<0.000000e+00> : vector<24x32xf32>
    %43 = tpu.matmul %40, %42, %cst_40 {dimension_numbers = #tpu.dot_dimension_numbers<[1], [0], [0], [1], [0, 0, 1, 1], [], []>} : vector<24x32xf32>, vector<32x32xf32>, vector<24x32xf32> -> vector<24x32xf32>
    %44 = arith.addf %34, %43 : vector<24x32xf32>
    %c7_41 = arith.constant 7 : index
    %c0_42 = arith.constant 0 : index
    %45 = vector.load %arg4[%c7_41, %c0_42] : memref<40x32xf32, #tpu.memory_space<vmem>>, vector<24x32xf32>
    %c2 = arith.constant 2 : index
    %c0_43 = arith.constant 0 : index
    %c0_44 = arith.constant 0 : index
    %46 = vector.load %arg1[%c2, %c0_43, %c0_44] : memref<14x32x32xf32, #tpu.memory_space<vmem>>, vector<1x32x32xf32>
    %47 = vector.shape_cast %46 : vector<1x32x32xf32> to vector<32x32xf32>
    %cst_45 = arith.constant dense<0.000000e+00> : vector<24x32xf32>
    %48 = tpu.matmul %45, %47, %cst_45 {dimension_numbers = #tpu.dot_dimension_numbers<[1], [0], [0], [1], [0, 0, 1, 1], [], []>} : vector<24x32xf32>, vector<32x32xf32>, vector<24x32xf32> -> vector<24x32xf32>
    %49 = arith.addf %39, %48 : vector<24x32xf32>
    %c7_46 = arith.constant 7 : index
    %c0_47 = arith.constant 0 : index
    %50 = vector.load %arg5[%c7_46, %c0_47] : memref<40x32xf32, #tpu.memory_space<vmem>>, vector<24x32xf32>
    %c9 = arith.constant 9 : index
    %c0_48 = arith.constant 0 : index
    %c0_49 = arith.constant 0 : index
    %51 = vector.load %arg1[%c9, %c0_48, %c0_49] : memref<14x32x32xf32, #tpu.memory_space<vmem>>, vector<1x32x32xf32>
    %52 = vector.shape_cast %51 : vector<1x32x32xf32> to vector<32x32xf32>
    %cst_50 = arith.constant dense<0.000000e+00> : vector<24x32xf32>
    %53 = tpu.matmul %50, %52, %cst_50 {dimension_numbers = #tpu.dot_dimension_numbers<[1], [0], [0], [1], [0, 0, 1, 1], [], []>} : vector<24x32xf32>, vector<32x32xf32>, vector<24x32xf32> -> vector<24x32xf32>
    %54 = arith.addf %44, %53 : vector<24x32xf32>
    %c8_51 = arith.constant 8 : index
    %c0_52 = arith.constant 0 : index
    %55 = vector.load %arg4[%c8_51, %c0_52] : memref<40x32xf32, #tpu.memory_space<vmem>>, vector<24x32xf32>
    %c3 = arith.constant 3 : index
    %c0_53 = arith.constant 0 : index
    %c0_54 = arith.constant 0 : index
    %56 = vector.load %arg1[%c3, %c0_53, %c0_54] : memref<14x32x32xf32, #tpu.memory_space<vmem>>, vector<1x32x32xf32>
    %57 = vector.shape_cast %56 : vector<1x32x32xf32> to vector<32x32xf32>
    %cst_55 = arith.constant dense<0.000000e+00> : vector<24x32xf32>
    %58 = tpu.matmul %55, %57, %cst_55 {dimension_numbers = #tpu.dot_dimension_numbers<[1], [0], [0], [1], [0, 0, 1, 1], [], []>} : vector<24x32xf32>, vector<32x32xf32>, vector<24x32xf32> -> vector<24x32xf32>
    %59 = arith.addf %49, %58 : vector<24x32xf32>
    %c8_56 = arith.constant 8 : index
    %c0_57 = arith.constant 0 : index
    %60 = vector.load %arg5[%c8_56, %c0_57] : memref<40x32xf32, #tpu.memory_space<vmem>>, vector<24x32xf32>
    %c10 = arith.constant 10 : index
    %c0_58 = arith.constant 0 : index
    %c0_59 = arith.constant 0 : index
    %61 = vector.load %arg1[%c10, %c0_58, %c0_59] : memref<14x32x32xf32, #tpu.memory_space<vmem>>, vector<1x32x32xf32>
    %62 = vector.shape_cast %61 : vector<1x32x32xf32> to vector<32x32xf32>
    %cst_60 = arith.constant dense<0.000000e+00> : vector<24x32xf32>
    %63 = tpu.matmul %60, %62, %cst_60 {dimension_numbers = #tpu.dot_dimension_numbers<[1], [0], [0], [1], [0, 0, 1, 1], [], []>} : vector<24x32xf32>, vector<32x32xf32>, vector<24x32xf32> -> vector<24x32xf32>
    %64 = arith.addf %54, %63 : vector<24x32xf32>
    %c9_61 = arith.constant 9 : index
    %c0_62 = arith.constant 0 : index
    %65 = vector.load %arg4[%c9_61, %c0_62] : memref<40x32xf32, #tpu.memory_space<vmem>>, vector<24x32xf32>
    %c4 = arith.constant 4 : index
    %c0_63 = arith.constant 0 : index
    %c0_64 = arith.constant 0 : index
    %66 = vector.load %arg1[%c4, %c0_63, %c0_64] : memref<14x32x32xf32, #tpu.memory_space<vmem>>, vector<1x32x32xf32>
    %67 = vector.shape_cast %66 : vector<1x32x32xf32> to vector<32x32xf32>
    %cst_65 = arith.constant dense<0.000000e+00> : vector<24x32xf32>
    %68 = tpu.matmul %65, %67, %cst_65 {dimension_numbers = #tpu.dot_dimension_numbers<[1], [0], [0], [1], [0, 0, 1, 1], [], []>} : vector<24x32xf32>, vector<32x32xf32>, vector<24x32xf32> -> vector<24x32xf32>
    %69 = arith.addf %59, %68 : vector<24x32xf32>
    %c9_66 = arith.constant 9 : index
    %c0_67 = arith.constant 0 : index
    %70 = vector.load %arg5[%c9_66, %c0_67] : memref<40x32xf32, #tpu.memory_space<vmem>>, vector<24x32xf32>
    %c11 = arith.constant 11 : index
    %c0_68 = arith.constant 0 : index
    %c0_69 = arith.constant 0 : index
    %71 = vector.load %arg1[%c11, %c0_68, %c0_69] : memref<14x32x32xf32, #tpu.memory_space<vmem>>, vector<1x32x32xf32>
    %72 = vector.shape_cast %71 : vector<1x32x32xf32> to vector<32x32xf32>
    %cst_70 = arith.constant dense<0.000000e+00> : vector<24x32xf32>
    %73 = tpu.matmul %70, %72, %cst_70 {dimension_numbers = #tpu.dot_dimension_numbers<[1], [0], [0], [1], [0, 0, 1, 1], [], []>} : vector<24x32xf32>, vector<32x32xf32>, vector<24x32xf32> -> vector<24x32xf32>
    %74 = arith.addf %64, %73 : vector<24x32xf32>
    %c10_71 = arith.constant 10 : index
    %c0_72 = arith.constant 0 : index
    %75 = vector.load %arg4[%c10_71, %c0_72] : memref<40x32xf32, #tpu.memory_space<vmem>>, vector<24x32xf32>
    %c5_73 = arith.constant 5 : index
    %c0_74 = arith.constant 0 : index
    %c0_75 = arith.constant 0 : index
    %76 = vector.load %arg1[%c5_73, %c0_74, %c0_75] : memref<14x32x32xf32, #tpu.memory_space<vmem>>, vector<1x32x32xf32>
    %77 = vector.shape_cast %76 : vector<1x32x32xf32> to vector<32x32xf32>
    %cst_76 = arith.constant dense<0.000000e+00> : vector<24x32xf32>
    %78 = tpu.matmul %75, %77, %cst_76 {dimension_numbers = #tpu.dot_dimension_numbers<[1], [0], [0], [1], [0, 0, 1, 1], [], []>} : vector<24x32xf32>, vector<32x32xf32>, vector<24x32xf32> -> vector<24x32xf32>
    %79 = arith.addf %69, %78 : vector<24x32xf32>
    %c10_77 = arith.constant 10 : index
    %c0_78 = arith.constant 0 : index
    %80 = vector.load %arg5[%c10_77, %c0_78] : memref<40x32xf32, #tpu.memory_space<vmem>>, vector<24x32xf32>
    %c12 = arith.constant 12 : index
    %c0_79 = arith.constant 0 : index
    %c0_80 = arith.constant 0 : index
    %81 = vector.load %arg1[%c12, %c0_79, %c0_80] : memref<14x32x32xf32, #tpu.memory_space<vmem>>, vector<1x32x32xf32>
    %82 = vector.shape_cast %81 : vector<1x32x32xf32> to vector<32x32xf32>
    %cst_81 = arith.constant dense<0.000000e+00> : vector<24x32xf32>
    %83 = tpu.matmul %80, %82, %cst_81 {dimension_numbers = #tpu.dot_dimension_numbers<[1], [0], [0], [1], [0, 0, 1, 1], [], []>} : vector<24x32xf32>, vector<32x32xf32>, vector<24x32xf32> -> vector<24x32xf32>
    %84 = arith.addf %74, %83 : vector<24x32xf32>
    %c11_82 = arith.constant 11 : index
    %c0_83 = arith.constant 0 : index
    %85 = vector.load %arg4[%c11_82, %c0_83] : memref<40x32xf32, #tpu.memory_space<vmem>>, vector<24x32xf32>
    %c6_84 = arith.constant 6 : index
    %c0_85 = arith.constant 0 : index
    %c0_86 = arith.constant 0 : index
    %86 = vector.load %arg1[%c6_84, %c0_85, %c0_86] : memref<14x32x32xf32, #tpu.memory_space<vmem>>, vector<1x32x32xf32>
    %87 = vector.shape_cast %86 : vector<1x32x32xf32> to vector<32x32xf32>
    %cst_87 = arith.constant dense<0.000000e+00> : vector<24x32xf32>
    %88 = tpu.matmul %85, %87, %cst_87 {dimension_numbers = #tpu.dot_dimension_numbers<[1], [0], [0], [1], [0, 0, 1, 1], [], []>} : vector<24x32xf32>, vector<32x32xf32>, vector<24x32xf32> -> vector<24x32xf32>
    %89 = arith.addf %79, %88 : vector<24x32xf32>
    %c11_88 = arith.constant 11 : index
    %c0_89 = arith.constant 0 : index
    %90 = vector.load %arg5[%c11_88, %c0_89] : memref<40x32xf32, #tpu.memory_space<vmem>>, vector<24x32xf32>
    %c13 = arith.constant 13 : index
    %c0_90 = arith.constant 0 : index
    %c0_91 = arith.constant 0 : index
    %91 = vector.load %arg1[%c13, %c0_90, %c0_91] : memref<14x32x32xf32, #tpu.memory_space<vmem>>, vector<1x32x32xf32>
    %92 = vector.shape_cast %91 : vector<1x32x32xf32> to vector<32x32xf32>
    %cst_92 = arith.constant dense<0.000000e+00> : vector<24x32xf32>
    %93 = tpu.matmul %90, %92, %cst_92 {dimension_numbers = #tpu.dot_dimension_numbers<[1], [0], [0], [1], [0, 0, 1, 1], [], []>} : vector<24x32xf32>, vector<32x32xf32>, vector<24x32xf32> -> vector<24x32xf32>
    %94 = arith.addf %84, %93 : vector<24x32xf32>
    %95 = arith.addf %89, %94 : vector<24x32xf32>
    %96 = vector.extract_strided_slice %95 {offsets = [0, 0], sizes = [16, 32], strides = [1, 1]} : vector<24x32xf32> to vector<16x32xf32>
    %97 = arith.negf %96 : vector<16x32xf32>
    %98 = math.exp %97 : vector<16x32xf32>
    %cst_93 = arith.constant 1.000000e+00 : f32
    %99 = vector.broadcast %cst_93 : f32 to vector<16x32xf32>
    %100 = arith.addf %99, %98 : vector<16x32xf32>
    %101 = arith.divf %99, %100 : vector<16x32xf32>
    %c0_94 = arith.constant 0 : index
    %c0_95 = arith.constant 0 : index
    %c0_96 = arith.constant 0 : index
    %102 = vector.load %arg3[%c0_94, %c0_95, %c0_96] : memref<1x16x32xf32, #tpu.memory_space<vmem>>, vector<1x16x32xf32>
    %103 = vector.shape_cast %102 : vector<1x16x32xf32> to vector<16x32xf32>
    %104 = vector.shape_cast %101 : vector<16x32xf32> to vector<1x16x32xf32>
    tpu.vector_store %arg3[%c0_94, %c0_95, %c0_96], %104 {strides = array<i32>} : memref<1x16x32xf32, #tpu.memory_space<vmem>>, vector<1x16x32xf32>,
    return
  }
  func.func @transform_0(%arg0: i32) -> (i32, i32, i32) {
    %c0_i32 = arith.constant 0 : i32
    %c0_i32_0 = arith.constant 0 : i32
    %c0_i32_1 = arith.constant 0 : i32
    %c0_i32_2 = arith.constant 0 : i32
    return %c0_i32, %c0_i32_0, %c0_i32_1 : i32, i32, i32
  }
  func.func @transform_1(%arg0: i32) -> (i32, i32, i32, i32) {
    %c0_i32 = arith.constant 0 : i32
    %c0_i32_0 = arith.constant 0 : i32
    %c0_i32_1 = arith.constant 0 : i32
    %c0_i32_2 = arith.constant 0 : i32
    return %arg0, %c0_i32, %c0_i32_0, %c0_i32_1 : i32, i32, i32, i32
  }
  func.func @transform_2(%arg0: i32) -> (i32, i32, i32) {
    %c0_i32 = arith.constant 0 : i32
    %c0_i32_0 = arith.constant 0 : i32
    %c0_i32_1 = arith.constant 0 : i32
    return %arg0, %c0_i32, %c0_i32_0 : i32, i32, i32
  }
}

</mosaic_0001>

<bundles_post_ra>
// kernel: tpu_custom_call.1
= control target key start
LH: loop header
LB: loop body
LE: loop exit
PB: predicated region body
PF: predicated region fallthrough
CT: control target
= control target key end

     0   :  { %7 = vsyncpa [#allocation5], 0  ;;  %s2588_s0 = inlined_call_operand.hbm [shape: f32[14,32,32], index: 0, kind: input, shape index: {}]   ;;  %s2589_s1 = inlined_call_operand.hbm [shape: f32[2,4,16,16], index: 1, kind: input, shape index: {}]   ;;  %s2590_s2 = inlined_call_operand.hbm [shape: f32[1,16,32], index: 2, kind: output, shape index: {}]  }
   0x1   :  { %8 = vsyncpa [#allocation8], 0 }
   0x2   :  { %9 = vsyncpa [#allocation6], 0  ;;  %s2323_s9 = smov [#allocation4]   ;;  %s2171_s13 = scalar_lea.hbm %s2588_s0, 7168 }
   0x3   :  { %s15_s10 = sshll.u32 %s2323_s9, 4  ;;  %p2172_p0 = scmp.ne.s32.totalorder %s2588_s0, %s2171_s13  ;;  %s16_s10 = int_to_ptr.vmem [resolvable:$true] %s15_s10 }
   0x4   :  { %p2175_p1 = scmp.lt.u32.totalorder %s2171_s13, %s2588_s0 }
   0x6   :  { %p2177_p2 = pnand %p2175_p1, %p2172_p0 }
   0x8   :  { %2180 = shalt.err (!%p2177_p2)
}
   0x9   :  { %s2181_s18 = scalar_lea.vmem %s16_s10, 7168  ;;  %p2186_p4 = scmp.lt.s32.totalorder %s16_s10, %s16_s10 }
   0xa   :  { %p2182_p3 = scmp.ne.s32.totalorder %s16_s10, %s2181_s18  ;;  %p2187_p5 = scmp.lt.s32.totalorder %s2181_s18, %s2181_s18 }
   0xc   :  { %p2188_p6 = por %p2187_p5, %p2186_p4 }
   0xe   :  { %p2189_p7 = pnand %p2188_p6, %p2182_p3 }
  0x10   :  { %2192 = shalt.err (!%p2189_p7)
}
  0x11   :  { %s2324_s19 = smov 128   ;;  %s2325_s20 = smov 8  }
  0x12   :  { %21 = dma.hbm_to_vmem [thread:$0]  %s2588_s0, 7168, %s16_s10, [#allocation5], %s2324_s19, %s2324_s19, %s2325_s20  }
  0x13   :  { %s2326_s23 = smov [#allocation7]   ;;  %s2193_s27 = scalar_lea.hbm %s2589_s1, 2048 }
  0x14   :  { %s27_s24 = sshll.u32 %s2326_s23, 4  ;;  %p2194_p8 = scmp.ne.s32.totalorder %s2589_s1, %s2193_s27  ;;  %s28_s24 = int_to_ptr.vmem [resolvable:$true] %s27_s24 }
  0x15   :  { %p2197_p9 = scmp.lt.u32.totalorder %s2193_s27, %s2589_s1 }
  0x17   :  { %p2199_p10 = pnand %p2197_p9, %p2194_p8 }
  0x19   :  { %2202 = shalt.err (!%p2199_p10)
}
  0x1a   :  { %s2203_s4 = scalar_lea.vmem %s28_s24, 2048  ;;  %p2208_p12 = scmp.lt.s32.totalorder %s28_s24, %s28_s24 }
  0x1b   :  { %p2204_p11 = scmp.ne.s32.totalorder %s28_s24, %s2203_s4  ;;  %p2209_p13 = scmp.lt.s32.totalorder %s2203_s4, %s2203_s4 }
  0x1d   :  { %p2210_p0 = por %p2209_p13, %p2208_p12 }
  0x1f   :  { %p2211_p1 = pnand %p2210_p0, %p2204_p11 }
  0x21   :  { %2214 = shalt.err (!%p2211_p1)
}
  0x22   :  { %33 = dma.hbm_to_vmem [thread:$0]  %s2589_s1, 2048, %s28_s24, [#allocation8], %s2324_s19, %s2324_s19, %s2325_s20  }
  0x23   :  { %2277 = dma.done.wait [#allocation5], 7168  }
  0x24   :  { %2278 = vsyncadd [#allocation5], 4294960128 }
  0x25   :  { %2279 = dma.done.wait [#allocation8], 2048  }
  0x26   :  { %2280 = vsyncadd [#allocation8], 4294965248  ;;  %vm40_vm0 = vcmask 261120   ;;  %v2327_v0 = vmov 0.0   ;;  %v51_v1 = vld [vmem:[#allocation7] sm:$0xff]   ;;  %v52_v2 = vld [vmem:[#allocation7 + $0x8] sm:$0xff]  }
  0x27   :  { %41 = vst.msk [vmem:[#allocation2] sm:$0xff] %vm40_vm0, %v2327_v0  ;;  %42 = vst.msk [vmem:[#allocation2 + $0x8] sm:$0xff] %vm40_vm0, %v2327_v0  ;;  %v2283_v3 = vmov %v52_v2   ;;  %v2287_v4 = vmov %v51_v1   ;;  %v2291_v5 = vmov %v52_v2   ;;  %v2295_v6 = vmov %v51_v1   ;;  %s2299_s1 = smov 1  }
  0x28   :  { %43 = vst.msk [vmem:[#allocation2 + $0x10] sm:$0xff] %vm40_vm0, %v2327_v0  ;;  %44 = vst.msk [vmem:[#allocation2 + $0x18] sm:$0xff] %vm40_vm0, %v2327_v0 }
  0x29   :  { %45 = vst.msk [vmem:[#allocation2 + $0x20] sm:$0xff] %vm40_vm0, %v2327_v0  ;;  %46 = vst.msk [vmem:[#allocation3] sm:$0xff] %vm40_vm0, %v2327_v0 }
  0x2a   :  { %47 = vst.msk [vmem:[#allocation3 + $0x8] sm:$0xff] %vm40_vm0, %v2327_v0  ;;  %48 = vst.msk [vmem:[#allocation3 + $0x10] sm:$0xff] %vm40_vm0, %v2327_v0 }
  0x2b   :  { %49 = vst.msk [vmem:[#allocation3 + $0x18] sm:$0xff] %vm40_vm0, %v2327_v0  ;;  %50 = vst.msk [vmem:[#allocation3 + $0x20] sm:$0xff] %vm40_vm0, %v2327_v0 }
  0x2c LB: > { %s1556_s6 = sshll.u32 %s2301_s1, 4  ;;  %s58_s1 = sadd.s32 1, %s2301_s1   ;;  %s2301_s1 = sphi %s2299_s1, %s58_s1   ;;  %v2297_v6 = vphi %v2295_v6, %v2296_v6   ;;  %v2293_v5 = vphi %v2291_v5, %v2292_v5   ;;  %v2289_v4 = vphi %v2287_v4, %v2288_v4   ;;  %v2285_v3 = vphi %v2283_v3, %v2284_v3  }
  0x2d   : > { %s64_s7 = scalar_lea.vmem [#allocation7], %s1556_s6  ;;  %p55_p2 = scmp.ge.s32.totalorder %s58_s1, 4  }
  0x2e   : > { %v65_v7 = vld [vmem:[%s64_s7] sm:$0xff]  ;;  %v66_v8 = vld [vmem:[%s64_s7 + $0x8] sm:$0xff]  ;;  %v72_v13 = vld [vmem:[#allocation7 + $0x40] sm:$0xff] (%p55_p2)   ;;  %s2319_s8 = smov (%p55_p2), 1  }
  0x2f   : > { %v2397_v6 = vadd.f32 %v2297_v6, %v65_v7   ;;  %v2399_v5 = vadd.f32 %v2293_v5, %v66_v8   ;;  %v2401_v4 = vmax.f32 %v2289_v4, %v65_v7   ;;  %v2403_v3 = vmax.f32 %v2285_v3, %v66_v8   ;;  %57 = sbr.rel (!%p55_p2) target bundleno = 44 (0x2c), region = 68  ;;  %v73_v14 = vld [vmem:[#allocation7 + $0x48] sm:$0xff] (%p55_p2)  }
  0x30   :  { %v2303_v15 = vmov (%p55_p2), %v73_v14   ;;  %v2307_v16 = vmov (%p55_p2), %v72_v13   ;;  %v2311_v17 = vmov (%p55_p2), %v73_v14   ;;  %v2315_v18 = vmov (%p55_p2), %v72_v13  }
  0x31   : > { %v2591_v9 = vmov %v2397_v6  ;;  %v2592_v10 = vmov %v2399_v5  ;;  %v2593_v11 = vmov %v2401_v4  ;;  %v2594_v12 = vmov %v2403_v3 }
  0x32   : > { %v2284_v3 = vmov %v2594_v12   ;;  %v2288_v4 = vmov %v2593_v11   ;;  %v2292_v5 = vmov %v2592_v10   ;;  %v2296_v6 = vmov %v2591_v9  }
  0x36 LB: > { %s1557_s9 = sshll.u32 %s2321_s8, 4  ;;  %s79_s8 = sadd.s32 1, %s2321_s8   ;;  %s2321_s8 = sphi %s2319_s8, %s79_s8   ;;  %v2317_v18 = vphi %v2315_v18, %v2316_v18   ;;  %v2313_v17 = vphi %v2311_v17, %v2312_v17   ;;  %v2309_v16 = vphi %v2307_v16, %v2308_v16   ;;  %v2305_v15 = vphi %v2303_v15, %v2304_v15  }
  0x37   : > { %s1520_s10 = scalar_lea.vmem [#allocation7], %s1557_s9  ;;  %p76_p3 = scmp.ge.s32.totalorder %s79_s8, 4  }
  0x38   : > { %v1558_v19 = vld [vmem:[%s1520_s10 + $0x40] sm:$0xff]  ;;  %v1559_v20 = vld [vmem:[%s1520_s10 + $0x48] sm:$0xff]  ;;  %v139_v25 = vld [vmem:[#allocation4 + $0x20] sm:$0xff] (%p76_p3)  ;;  %s2328_s11 = smov (%p76_p3), 16   ;;  %v2329_v32 = vmov (%p76_p3), 0.0|0.0   ;;  %vm2330_vm1 = vmmov (%p76_p3), 0  }
  0x39   : > { %v89_v21 = vadd.f32 %v2317_v18, %v1558_v19   ;;  %v90_v22 = vadd.f32 %v2313_v17, %v1559_v20   ;;  %v91_v23 = vmax.f32 %v2309_v16, %v1558_v19   ;;  %v92_v24 = vmax.f32 %v2305_v15, %v1559_v20   ;;  %78 = sbr.rel (!%p76_p3) target bundleno = 54 (0x36), region = 79  ;;  %v140_v26 = vld [vmem:[#allocation4 + $0x28] sm:$0xff] (%p76_p3)  ;;  %v801_v27 = vld [vmem:[#allocation4 + $0x140] sm:$0xff] (%p76_p3)  ;;  %v141_v30 = vld [vmem:[#allocation4 + $0x30] sm:$0xff] (%p76_p3)  ;;  %1940 = vmatprep.subr.bf16.mxu1 (%p76_p3), %v2329_v32  ;;  %s2331_s12 = smov (%p76_p3), [#allocation9]  }
  0x3a   :  { %v1941_v28 = vpack.c.bf16 (%p76_p3), %v140_v26, %v139_v25  ;;  %v802_v29 = vld [vmem:[#allocation4 + $0x148] sm:$0xff] (%p76_p3)  ;;  %v142_v31 = vld [vmem:[#allocation4 + $0x38] sm:$0xff] (%p76_p3)  ;;  %1982 = vmatprep.subr.bf16.mxu0 (%p76_p3), %v2329_v32  ;;  %v803_v34 = vld [vmem:[#allocation4 + $0x150] sm:$0xff] (%p76_p3)  ;;  %1710 = vmatprep.mubr.msk.f32.mxu1 (%p76_p3), %vm2330_vm1, %v2327_v0  ;;  %vm101_vm2 = vcmask (%p76_p3), 130048   ;;  %s1504_s13 = sshll.u32 (%p76_p3), %s2331_s12, 4  ;;  %s1505_s13 = int_to_ptr.vmem [resolvable:$true] %s1504_s13 }
  0x3b   : > { %v2304_v15 = vmov %v92_v24   ;;  %v2308_v16 = vmov %v91_v23   ;;  %v2312_v17 = vmov %v90_v22   ;;  %v2316_v18 = vmov %v89_v21   ;;  %97 = vrot.lane.b32.xlu1 (%p76_p3), %v90_v22, %s2328_s11  ;;  %95 = vrot.lane.b32.xlu0 (%p76_p3), %v89_v21, %s2328_s11  ;;  %v804_v35 = vld [vmem:[#allocation4 + $0x158] sm:$0xff] (%p76_p3)  ;;  %v123_v44 = vld [vmem:[#allocation4] sm:$0xff] (%p76_p3)  ;;  %v124_v45 = vld [vmem:[#allocation4 + $0x8] sm:$0xff] (%p76_p3)  ;;  %s2215_s14 = scalar_lea.vmem (%p76_p3), %s1505_s13, 256  ;;  %p2220_p5 = scmp.lt.s32.totalorder (%p76_p3), %s1505_s13, %s1505_s13 }
  0x3c   :  { %v1983_v33 = vpack.c.bf16 (%p76_p3), %v802_v29, %v801_v27  ;;  %1942 = vmatpush3.bf16.msra.mxu1 (%p76_p3), %v1941_v28  ;;  %v1944_v36 = vpack.c.bf16 (%p76_p3), %v142_v31, %v141_v30  ;;  %v1986_v37 = vpack.c.bf16 (%p76_p3), %v804_v35, %v803_v34  ;;  %1829 = vmatprep.mubr.msk.f32.mxu0 (%p76_p3), %vm2330_vm1, %v2327_v0  ;;  %v899_v49 = vld [vmem:[#allocation4 + $0x80] sm:$0xff] (%p76_p3)  ;;  %v900_v50 = vld [vmem:[#allocation4 + $0x88] sm:$0xff] (%p76_p3)  ;;  %v125_v52 = vld [vmem:[#allocation4 + $0x10] sm:$0xff] (%p76_p3)  ;;  %p2216_p4 = scmp.ne.s32.totalorder (%p76_p3), %s1505_s13, %s2215_s14  ;;  %p2221_p6 = scmp.lt.s32.totalorder (%p76_p3), %s2215_s14, %s2215_s14 }
  0x3d   :  { %1943 = vmatprep.subr.bf16.mxu1 (%p76_p3), %v2329_v32  ;;  %v1947_v48 = vpack.c.bf16 (%p76_p3), %v124_v45, %v123_v44  ;;  %v126_v53 = vld [vmem:[#allocation4 + $0x18] sm:$0xff] (%p76_p3)  ;;  %v1989_v54 = vpack.c.bf16 (%p76_p3), %v900_v50, %v899_v49  ;;  %v901_v56 = vld [vmem:[#allocation4 + $0x90] sm:$0xff] (%p76_p3)  ;;  %v323_v63 = vld [vmem:[#allocation4 + $0x100] sm:$0xff] (%p76_p3) }
  0x3e   :  { %1984 = vmatpush3.bf16.msra.mxu0 (%p76_p3), %v1983_v33  ;;  %v1950_v55 = vpack.c.bf16 (%p76_p3), %v126_v53, %v125_v52  ;;  %v902_v57 = vld [vmem:[#allocation4 + $0x98] sm:$0xff] (%p76_p3)  ;;  %v324_v1 = vld [vmem:[#allocation4 + $0x108] sm:$0xff] (%p76_p3)  ;;  %v799_v2 = vld [vmem:[#allocation3 + $0x18] sm:$0xff] (%p76_p3)  ;;  %p2222_p7 = por (%p76_p3), %p2221_p6, %p2220_p5 }
  0x3f   :  { %111 = vrot.lane.b32.xlu1 (%p76_p3), %v92_v24, %s2328_s11  ;;  %109 = vrot.lane.b32.xlu0 (%p76_p3), %v91_v23, %s2328_s11  ;;  %v1992_v61 = vpack.c.bf16 (%p76_p3), %v902_v57, %v901_v56  ;;  %v1953_v3 = vpack.c.bf16 (%p76_p3), %v324_v1, %v323_v63  ;;  %v997_v4 = vld [vmem:[#allocation4 + $0x160] sm:$0xff] (%p76_p3)  ;;  %v998_v5 = vld [vmem:[#allocation4 + $0x168] sm:$0xff] (%p76_p3)  ;;  %v325_v7 = vld [vmem:[#allocation4 + $0x110] sm:$0xff] (%p76_p3) }
  0x40   :  { %1985 = vmatprep.subr.bf16.mxu0 %v2329_v32  ;;  %1945 = vmatpush3.bf16.msra.mxu1 %v1944_v36  ;;  %v326_v8 = vld [vmem:[#allocation4 + $0x118] sm:$0xff]  ;;  %v131_v16 = vld [vmem:[#allocation4 + $0xe0] sm:$0xff]  ;;  %v132_v19 = vld [vmem:[#allocation4 + $0xe8] sm:$0xff]  ;;  %p2223_p8 = pnand %p2222_p7, %p2216_p4 }
  0x41   :  { %1946 = vmatprep.subr.bf16.mxu1 %v2329_v32  ;;  %v897_v20 = vld [vmem:[#allocation2 + $0x19] sm:$0xff]  ;;  %v1959_v21 = vpack.c.bf16 %v132_v19, %v131_v16  ;;  %v1095_v22 = vld [vmem:[#allocation4 + $0xa0] sm:$0xff]  ;;  %v134_v26 = vld [vmem:[#allocation4 + $0xf8] sm:$0xff] }
  0x42   :  { %1987 = vmatpush3.bf16.msra.mxu0 %v1986_v37  ;;  %v1096_v23 = vld [vmem:[#allocation4 + $0xa8] sm:$0xff]  ;;  %v133_v25 = vld [vmem:[#allocation4 + $0xf0] sm:$0xff]  ;;  %v1098_v30 = vld [vmem:[#allocation4 + $0xb8] sm:$0xff] }
  0x43   :  { %1988 = vmatprep.subr.bf16.mxu0 %v2329_v32  ;;  %v2001_v27 = vpack.c.bf16 %v1096_v23, %v1095_v22  ;;  %v1962_v28 = vpack.c.bf16 %v134_v26, %v133_v25  ;;  %v1097_v29 = vld [vmem:[#allocation4 + $0xb0] sm:$0xff]  ;;  %v507_v35 = vld [vmem:[#allocation4 + $0x40] sm:$0xff]  ;;  %v510_v45 = vld [vmem:[#allocation4 + $0x58] sm:$0xff] }
  0x44   :  { %v2004_v34 = vpack.c.bf16 %v1098_v30, %v1097_v29  ;;  %v509_v44 = vld [vmem:[#allocation4 + $0x50] sm:$0xff]  ;;  %v1196_v49 = vld [vmem:[#allocation4 + $0x198] sm:$0xff]  ;;  %v605_v53 = vld [vmem:[#allocation4 + $0x120] sm:$0xff] }
  0x45   :  { %v606_v56 = vld [vmem:[#allocation4 + $0x128] sm:$0xff]  ;;  %v608_v63 = vld [vmem:[#allocation4 + $0x138] sm:$0xff] }
  0x46   :  { %v1093_v57 = vld [vmem:[#allocation2 + $0x1a] sm:$0xff]  ;;  %v1392_v22 = vld [vmem:[#allocation4 + $0x1b8] sm:$0xff] }
  0xad   :  { %v98_v38 = vpop.permute.xlu1 %97  ;;  %v96_v39 = vpop.permute.xlu0 %95 }
  0xae   :  { %v103_v40 = vsel %vm101_vm2, %v2592_v10, %v98_v38  ;;  %v102_v41 = vsel %vm101_vm2, %v2591_v9, %v96_v39  ;;  %v1995_v9 = vpack.c.bf16 %v998_v5, %v997_v4  ;;  %v1956_v10 = vpack.c.bf16 %v326_v8, %v325_v7  ;;  %v508_v38 = vld [vmem:[#allocation4 + $0x48] sm:$0xff]  ;;  %v995_v39 = vld [vmem:[#allocation3 + $0x19] sm:$0xff]  ;;  %v703_v8 = vld [vmem:[#allocation4 + $0x60] sm:$0xff] }
  0xaf   :  { %106 = vst.msk [vmem:[#allocation2 + $0x10] sm:$0xff] %vm40_vm0, %v103_v40  ;;  %105 = vst.msk [vmem:[#allocation2 + $0x8] sm:$0xff] %vm40_vm0, %v102_v41  ;;  %v1965_v40 = vpack.c.bf16 %v508_v38, %v507_v35  ;;  %v1193_v41 = vld [vmem:[#allocation4 + $0x180] sm:$0xff]  ;;  %v1294_v4 = vld [vmem:[#allocation4 + $0xd8] sm:$0xff] }
  0xb1   :  { %v112_v42 = vpop.permute.xlu1 %111  ;;  %v110_v43 = vpop.permute.xlu0 %109 }
  0xb2   :  { %v116_v46 = vsel %vm101_vm2, %v2594_v12, %v112_v42  ;;  %v115_v47 = vsel %vm101_vm2, %v2593_v11, %v110_v43  ;;  %v999_v11 = vld [vmem:[#allocation4 + $0x170] sm:$0xff]  ;;  %v1000_v12 = vld [vmem:[#allocation4 + $0x178] sm:$0xff]  ;;  %v1194_v42 = vld [vmem:[#allocation4 + $0x188] sm:$0xff] }
  0xb3   :  { %119 = vst.msk [vmem:[#allocation3 + $0x10] sm:$0xff] %vm40_vm0, %v116_v46  ;;  %118 = vst.msk [vmem:[#allocation3 + $0x8] sm:$0xff] %vm40_vm0, %v115_v47  ;;  %v1998_v15 = vpack.c.bf16 %v1000_v12, %v999_v11  ;;  %v2007_v46 = vpack.c.bf16 %v1194_v42, %v1193_v41  ;;  %v1968_v47 = vpack.c.bf16 %v510_v45, %v509_v44  ;;  %v704_v11 = vld [vmem:[#allocation4 + $0x68] sm:$0xff]  ;;  %v1191_v12 = vld [vmem:[#allocation3 + $0x1a] sm:$0xff] }
  0xb6   :  { %v135_v51 = vld [vmem:[#allocation2 + $0x6] sm:$0xff]  ;;  %v136_v58 = vld [vmem:[#allocation2 + $0xe] sm:$0xff]  ;;  %v137_v62 = vld [vmem:[#allocation2 + $0x16] sm:$0xff] }
  0xb7   :  { %1711 = vmatmul.mubr.msk.f32.vlgmr.msra.gmra.mrb[0].mxu1 %vm40_vm0, %v135_v51  ;;  %v120_v6 = vld [vmem:[#allocation2 + $0x5] sm:$0xff]  ;;  %v121_v13 = vld [vmem:[#allocation2 + $0xd] sm:$0xff]  ;;  %v122_v17 = vld [vmem:[#allocation2 + $0x15] sm:$0xff] }
  0xb8   :  { %1713 = vmatprep.mubr.msk.f32.mxu1 %vm2330_vm1, %v2327_v0  ;;  %1948 = vmatpush3.bf16.msra.mxu1 %v1947_v48  ;;  %v895_v14 = vld [vmem:[#allocation2 + $0x9] sm:$0xff]  ;;  %v896_v18 = vld [vmem:[#allocation2 + $0x11] sm:$0xff]  ;;  %v1195_v48 = vld [vmem:[#allocation4 + $0x190] sm:$0xff] }
  0xb9   :  { %1949 = vmatprep.subr.bf16.mxu1 %v2329_v32  ;;  %v1091_v51 = vld [vmem:[#allocation2 + $0xa] sm:$0xff]  ;;  %v2010_v52 = vpack.c.bf16 %v1196_v49, %v1195_v48 }
  0xba   :  { %v797_v59 = vld [vmem:[#allocation3 + $0x8] sm:$0xff]  ;;  %v798_v60 = vld [vmem:[#allocation3 + $0x10] sm:$0xff]  ;;  %v699_v29 = vld [vmem:[#allocation2 + $0x8] sm:$0xff] }
  0xbb   :  { %1714 = vmatmul.mubr.msk.f32.gmra.mrb[2].mxu1 %vm40_vm0, %v136_v58  ;;  %1830 = vmatmul.mubr.msk.f32.vlgmr.msra.gmra.mrb[0].mxu0 %vm40_vm0, %v797_v59  ;;  %v319_v24 = vld [vmem:[#allocation3 + $0x6] sm:$0xff]  ;;  %v320_v31 = vld [vmem:[#allocation3 + $0xe] sm:$0xff]  ;;  %v321_v36 = vld [vmem:[#allocation3 + $0x16] sm:$0xff]  ;;  %v1971_v58 = vpack.c.bf16 %v606_v56, %v605_v53 }
  0xbc   :  { %1990 = vmatpush3.bf16.msra.mxu0 %v1989_v54  ;;  %1716 = vmatprep.mubr.msk.f32.mxu1 %vm2330_vm1, %v2327_v0  ;;  %v993_v33 = vld [vmem:[#allocation3 + $0x9] sm:$0xff]  ;;  %v994_v37 = vld [vmem:[#allocation3 + $0x11] sm:$0xff] }
  0xbd   :  { %1832 = vmatprep.mubr.msk.f32.mxu0 %vm2330_vm1, %v2327_v0  ;;  %1951 = vmatpush3.bf16.msra.mxu1 %v1950_v55  ;;  %v127_v43 = vld [vmem:[#allocation3 + $0x5] sm:$0xff]  ;;  %v128_v50 = vld [vmem:[#allocation3 + $0xd] sm:$0xff]  ;;  %v129_v54 = vld [vmem:[#allocation3 + $0x15] sm:$0xff] }
  0xbe   :  { %1991 = vmatprep.subr.bf16.mxu0 %v2329_v32  ;;  %1952 = vmatprep.subr.bf16.mxu1 %v2329_v32  ;;  %v1092_v55 = vld [vmem:[#allocation2 + $0x12] sm:$0xff]  ;;  %v603_v26 = vld [vmem:[#allocation3 + $0x17] sm:$0xff] }
  0xbf   :  { %1717 = vmatmul.mubr.msk.f32.gmra.mrb[4].mxu1 %vm40_vm0, %v137_v62  ;;  %1833 = vmatmul.mubr.msk.f32.gmra.mrb[2].mxu0 %vm40_vm0, %v798_v60  ;;  %v1291_v59 = vld [vmem:[#allocation4 + $0xc0] sm:$0xff]  ;;  %v1292_v60 = vld [vmem:[#allocation4 + $0xc8] sm:$0xff]  ;;  %v607_v62 = vld [vmem:[#allocation4 + $0x130] sm:$0xff] }
  0xc0   :  { %1993 = vmatpush3.bf16.msra.mxu0 %v1992_v61  ;;  %1727 = vmatprep.mubr.msk.f32.mxu1 %vm2330_vm1, %v2327_v0  ;;  %v503_v61 = vld [vmem:[#allocation2 + $0x7] sm:$0xff]  ;;  %v2013_v1 = vpack.c.bf16 %v1292_v60, %v1291_v59  ;;  %v504_v5 = vld [vmem:[#allocation2 + $0xf] sm:$0xff]  ;;  %v602_v23 = vld [vmem:[#allocation3 + $0xf] sm:$0xff] }
  0xc1   :  { %1835 = vmatprep.mubr.msk.f32.mxu0 %vm2330_vm1, %v2327_v0  ;;  %1994 = vmatprep.subr.bf16.mxu0 %v2329_v32  ;;  %v601_v16 = vld [vmem:[#allocation3 + $0x7] sm:$0xff] }
  0xc2   :  { %v1385_v30 = vld [vmem:[#allocation3 + $0xb] sm:$0xff] }
  0xc3   :  { %1728 = vmatmul.mubr.msk.f32.vlgmr.msra.gmra.mrb[0].mxu1 %vm40_vm0, %v120_v6  ;;  %1836 = vmatmul.mubr.msk.f32.gmra.mrb[4].mxu0 %vm40_vm0, %v799_v2  ;;  %v1974_v2 = vpack.c.bf16 %v608_v63, %v607_v62  ;;  %v1189_v6 = vld [vmem:[#allocation3 + $0xa] sm:$0xff] }
  0xc4   :  { %1730 = vmatprep.mubr.msk.f32.mxu1 %vm2330_vm1, %v2327_v0  ;;  %1846 = vmatprep.mubr.msk.f32.mxu0 %vm2330_vm1, %v2327_v0 }
  0xc5   :  { %1954 = vmatpush3.bf16.msra.mxu1 %v1953_v3  ;;  %v1293_v3 = vld [vmem:[#allocation4 + $0xd0] sm:$0xff] }
  0xc6   :  { %1955 = vmatprep.subr.bf16.mxu1 %v2329_v32  ;;  %v2016_v7 = vpack.c.bf16 %v1294_v4, %v1293_v3 }
  0xc7   :  { %1731 = vmatmul.mubr.msk.f32.gmra.mrb[2].mxu1 %vm40_vm0, %v121_v13  ;;  %1847 = vmatmul.mubr.msk.f32.vlgmr.msra.gmra.mrb[0].mxu0 %vm40_vm0, %v895_v14  ;;  %v1977_v13 = vpack.c.bf16 %v704_v11, %v703_v8  ;;  %v1389_v14 = vld [vmem:[#allocation4 + $0x1a0] sm:$0xff] }
  0xc8   :  { %1996 = vmatpush3.bf16.msra.mxu0 %v1995_v9  ;;  %1733 = vmatprep.mubr.msk.f32.mxu1 %vm2330_vm1, %v2327_v0  ;;  %v505_v9 = vld [vmem:[#allocation2 + $0x17] sm:$0xff] }
  0xc9   :  { %1849 = vmatprep.mubr.msk.f32.mxu0 %vm2330_vm1, %v2327_v0  ;;  %1957 = vmatpush3.bf16.msra.mxu1 %v1956_v10  ;;  %v1190_v10 = vld [vmem:[#allocation3 + $0x12] sm:$0xff] }
  0xca   :  { %1997 = vmatprep.subr.bf16.mxu0 %v2329_v32  ;;  %1958 = vmatprep.subr.bf16.mxu1 %v2329_v32 }
  0xcb   :  { %1734 = vmatmul.mubr.msk.f32.gmra.mrb[6].mxu1 %vm40_vm0, %v122_v17  ;;  %1850 = vmatmul.mubr.msk.f32.gmra.mrb[2].mxu0 %vm40_vm0, %v896_v18  ;;  %v705_v17 = vld [vmem:[#allocation4 + $0x70] sm:$0xff]  ;;  %v706_v18 = vld [vmem:[#allocation4 + $0x78] sm:$0xff] }
  0xcc   :  { %1999 = vmatpush3.bf16.msra.mxu0 %v1998_v15  ;;  %1744 = vmatprep.mubr.msk.f32.mxu1 %vm2330_vm1, %v2327_v0  ;;  %v1390_v15 = vld [vmem:[#allocation4 + $0x1a8] sm:$0xff] }
  0xcd   :  { %1852 = vmatprep.mubr.msk.f32.mxu0 %vm2330_vm1, %v2327_v0  ;;  %2000 = vmatprep.subr.bf16.mxu0 %v2329_v32  ;;  %v2019_v19 = vpack.c.bf16 %v1390_v15, %v1389_v14 }
  0xcf   :  { %1745 = vmatmul.mubr.msk.f32.vlgmr.msra.gmra.mrb[0].mxu1 %vm40_vm0, %v319_v24  ;;  %1853 = vmatmul.mubr.msk.f32.gmra.mrb[6].mxu0 %vm40_vm0, %v897_v20  ;;  %v1980_v20 = vpack.c.bf16 %v706_v18, %v705_v17  ;;  %v1287_v24 = vld [vmem:[#allocation2 + $0xb] sm:$0xff] }
  0xd0   :  { %1747 = vmatprep.mubr.msk.f32.mxu1 %vm2330_vm1, %v2327_v0  ;;  %1863 = vmatprep.mubr.msk.f32.mxu0 %vm2330_vm1, %v2327_v0 }
  0xd1   :  { %1960 = vmatpush3.bf16.msra.mxu1 %v1959_v21  ;;  %v1391_v21 = vld [vmem:[#allocation4 + $0x1b0] sm:$0xff] }
  0xd2   :  { %1961 = vmatprep.subr.bf16.mxu1 %v2329_v32  ;;  %v2022_v25 = vpack.c.bf16 %v1392_v22, %v1391_v21 }
  0xd3   :  { %1748 = vmatmul.mubr.msk.f32.gmra.mrb[2].mxu1 %vm40_vm0, %v320_v31  ;;  %1864 = vmatmul.mubr.msk.f32.vlgmr.msra.gmra.mrb[0].mxu0 %vm40_vm0, %v993_v33  ;;  %v701_v31 = vld [vmem:[#allocation2 + $0x18] sm:$0xff] }
  0xd4   :  { %2002 = vmatpush3.bf16.msra.mxu0 %v2001_v27  ;;  %1750 = vmatprep.mubr.msk.f32.mxu1 %vm2330_vm1, %v2327_v0  ;;  %v1288_v27 = vld [vmem:[#allocation2 + $0x13] sm:$0xff]  ;;  %v1386_v33 = vld [vmem:[#allocation3 + $0x13] sm:$0xff] }
  0xd5   :  { %1866 = vmatprep.mubr.msk.f32.mxu0 %vm2330_vm1, %v2327_v0  ;;  %1963 = vmatpush3.bf16.msra.mxu1 %v1962_v28  ;;  %v1289_v28 = vld [vmem:[#allocation2 + $0x1b] sm:$0xff] }
  0xd6   :  { %2003 = vmatprep.subr.bf16.mxu0 %v2329_v32  ;;  %1964 = vmatprep.subr.bf16.mxu1 %v2329_v32 }
  0xd7   :  { %1751 = vmatmul.mubr.msk.f32.gmra.mrb[8].mxu1 %vm40_vm0, %v321_v36  ;;  %1867 = vmatmul.mubr.msk.f32.gmra.mrb[2].mxu0 %vm40_vm0, %v994_v37 }
  0xd8   :  { %2005 = vmatpush3.bf16.msra.mxu0 %v2004_v34  ;;  %1761 = vmatprep.mubr.msk.f32.mxu1 %vm2330_vm1, %v2327_v0  ;;  %v1387_v34 = vld [vmem:[#allocation3 + $0x1b] sm:$0xff] }
  0xd9   :  { %1869 = vmatprep.mubr.msk.f32.mxu0 %vm2330_vm1, %v2327_v0  ;;  %2006 = vmatprep.subr.bf16.mxu0 %v2329_v32 }
  0xdb   :  { %1762 = vmatmul.mubr.msk.f32.vlgmr.msra.gmra.mrb[0].mxu1 %vm40_vm0, %v127_v43  ;;  %1870 = vmatmul.mubr.msk.f32.gmra.mrb[8].mxu0 %vm40_vm0, %v995_v39 }
  0xdc   :  { %1764 = vmatprep.mubr.msk.f32.mxu1 %vm2330_vm1, %v2327_v0  ;;  %1880 = vmatprep.mubr.msk.f32.mxu0 %vm2330_vm1, %v2327_v0 }
  0xdd   :  { %1966 = vmatpush3.bf16.msra.mxu1 %v1965_v40 }
  0xde   :  { %1967 = vmatprep.subr.bf16.mxu1 %v2329_v32 }
  0xdf   :  { %1765 = vmatmul.mubr.msk.f32.gmra.mrb[2].mxu1 %vm40_vm0, %v128_v50  ;;  %1881 = vmatmul.mubr.msk.f32.vlgmr.msra.gmra.mrb[0].mxu0 %vm40_vm0, %v1091_v51 }
  0xe0   :  { %2008 = vmatpush3.bf16.msra.mxu0 %v2007_v46  ;;  %1767 = vmatprep.mubr.msk.f32.mxu1 %vm2330_vm1, %v2327_v0 }
  0xe1   :  { %1883 = vmatprep.mubr.msk.f32.mxu0 %vm2330_vm1, %v2327_v0  ;;  %1969 = vmatpush3.bf16.msra.mxu1 %v1968_v47 }
  0xe2   :  { %2009 = vmatprep.subr.bf16.mxu0 %v2329_v32  ;;  %1970 = vmatprep.subr.bf16.mxu1 %v2329_v32 }
  0xe3   :  { %1768 = vmatmul.mubr.msk.f32.gmra.mrb[10].mxu1 %vm40_vm0, %v129_v54  ;;  %1884 = vmatmul.mubr.msk.f32.gmra.mrb[2].mxu0 %vm40_vm0, %v1092_v55 }
  0xe4   :  { %2011 = vmatpush3.bf16.msra.mxu0 %v2010_v52  ;;  %1778 = vmatprep.mubr.msk.f32.mxu1 %vm2330_vm1, %v2327_v0 }
  0xe5   :  { %1886 = vmatprep.mubr.msk.f32.mxu0 %vm2330_vm1, %v2327_v0  ;;  %2012 = vmatprep.subr.bf16.mxu0 %v2329_v32 }
  0xe7   :  { %1779 = vmatmul.mubr.msk.f32.vlgmr.msra.gmra.mrb[0].mxu1 %vm40_vm0, %v503_v61  ;;  %1887 = vmatmul.mubr.msk.f32.gmra.mrb[10].mxu0 %vm40_vm0, %v1093_v57 }
  0xe8   :  { %1781 = vmatprep.mubr.msk.f32.mxu1 %vm2330_vm1, %v2327_v0  ;;  %1897 = vmatprep.mubr.msk.f32.mxu0 %vm2330_vm1, %v2327_v0 }
  0xe9   :  { %1972 = vmatpush3.bf16.msra.mxu1 %v1971_v58 }
  0xea   :  { %1973 = vmatprep.subr.bf16.mxu1 %v2329_v32 }
  0xeb   :  { %1782 = vmatmul.mubr.msk.f32.gmra.mrb[2].mxu1 %vm40_vm0, %v504_v5  ;;  %1898 = vmatmul.mubr.msk.f32.vlgmr.msra.gmra.mrb[0].mxu0 %vm40_vm0, %v1189_v6 }
  0xec   :  { %2014 = vmatpush3.bf16.msra.mxu0 %v2013_v1  ;;  %1784 = vmatprep.mubr.msk.f32.mxu1 %vm2330_vm1, %v2327_v0 }
  0xed   :  { %1900 = vmatprep.mubr.msk.f32.mxu0 %vm2330_vm1, %v2327_v0  ;;  %1975 = vmatpush3.bf16.msra.mxu1 %v1974_v2 }
  0xee   :  { %2015 = vmatprep.subr.bf16.mxu0 %v2329_v32  ;;  %1976 = vmatprep.subr.bf16.mxu1 %v2329_v32 }
  0xef   :  { %1785 = vmatmul.mubr.msk.f32.gmra.mrb[12].mxu1 %vm40_vm0, %v505_v9  ;;  %1901 = vmatmul.mubr.msk.f32.gmra.mrb[2].mxu0 %vm40_vm0, %v1190_v10 }
  0xf0   :  { %2017 = vmatpush3.bf16.msra.mxu0 %v2016_v7  ;;  %1795 = vmatprep.mubr.msk.f32.mxu1 %vm2330_vm1, %v2327_v0 }
  0xf1   :  { %1903 = vmatprep.mubr.msk.f32.mxu0 %vm2330_vm1, %v2327_v0  ;;  %2018 = vmatprep.subr.bf16.mxu0 %v2329_v32 }
  0xf3   :  { %1796 = vmatmul.mubr.msk.f32.vlgmr.msra.gmra.mrb[0].mxu1 %vm40_vm0, %v601_v16  ;;  %1904 = vmatmul.mubr.msk.f32.gmra.mrb[12].mxu0 %vm40_vm0, %v1191_v12 }
  0xf4   :  { %1798 = vmatprep.mubr.msk.f32.mxu1 %vm2330_vm1, %v2327_v0  ;;  %1914 = vmatprep.mubr.msk.f32.mxu0 %vm2330_vm1, %v2327_v0 }
  0xf5   :  { %1978 = vmatpush3.bf16.msra.mxu1 %v1977_v13 }
  0xf6   :  { %1979 = vmatprep.subr.bf16.mxu1 %v2329_v32 }
  0xf7   :  { %1799 = vmatmul.mubr.msk.f32.gmra.mrb[2].mxu1 %vm40_vm0, %v602_v23  ;;  %1915 = vmatmul.mubr.msk.f32.vlgmr.msra.gmra.mrb[0].mxu0 %vm40_vm0, %v1287_v24 }
  0xf8   :  { %2020 = vmatpush3.bf16.msra.mxu0 %v2019_v19  ;;  %1801 = vmatprep.mubr.msk.f32.mxu1 %vm2330_vm1, %v2327_v0 }
  0xf9   :  { %1917 = vmatprep.mubr.msk.f32.mxu0 %vm2330_vm1, %v2327_v0  ;;  %1981 = vmatpush3.bf16.msra.mxu1 %v1980_v20 }
  0xfa   :  { %2021 = vmatprep.subr.bf16.mxu0 %v2329_v32  ;;  %v700_v32 = vld [vmem:[#allocation2 + $0x10] sm:$0xff] }
  0xfb   :  { %1802 = vmatmul.mubr.msk.f32.gmra.mrb[14].mxu1 %vm40_vm0, %v603_v26  ;;  %1918 = vmatmul.mubr.msk.f32.gmra.mrb[2].mxu0 %vm40_vm0, %v1288_v27 }
  0xfc   :  { %2023 = vmatpush3.bf16.msra.mxu0 %v2022_v25  ;;  %1812 = vmatprep.mubr.msk.f32.mxu1 %vm2330_vm1, %v2327_v0 }
  0xfd   :  { %1920 = vmatprep.mubr.msk.f32.mxu0 %vm2330_vm1, %v2327_v0 }
  0xff   :  { %1813 = vmatmul.mubr.msk.f32.vlgmr.msra.gmra.mrb[0].mxu1 %vm40_vm0, %v699_v29  ;;  %1921 = vmatmul.mubr.msk.f32.gmra.mrb[14].mxu0 %vm40_vm0, %v1289_v28 }
 0x100   :  { %1815 = vmatprep.mubr.msk.f32.mxu1 %vm2330_vm1, %v2327_v0  ;;  %1931 = vmatprep.mubr.msk.f32.mxu0 %vm2330_vm1, %v2327_v0 }
 0x103   :  { %1816 = vmatmul.mubr.msk.f32.gmra.mrb[2].mxu1 %vm40_vm0, %v700_v32  ;;  %1932 = vmatmul.mubr.msk.f32.vlgmr.msra.gmra.mrb[0].mxu0 %vm40_vm0, %v1385_v30 }
 0x104   :  { %1934 = vmatprep.mubr.msk.f32.mxu0 %vm2330_vm1, %v2327_v0  ;;  %1818 = vmatprep.mubr.msk.f32.mxu1 %vm2330_vm1, %v2327_v0 }
 0x107   :  { %1935 = vmatmul.mubr.msk.f32.gmra.mrb[2].mxu0 %vm40_vm0, %v1386_v33  ;;  %1819 = vmatmul.mubr.msk.f32.gmra.mrb[16].mxu1 %vm40_vm0, %v701_v31 }
 0x108   :  { %1937 = vmatprep.mubr.msk.f32.mxu0 %vm2330_vm1, %v2327_v0 }
 0x10b   :  { %1938 = vmatmul.mubr.msk.f32.gmra.mrb[16].mxu0 %vm40_vm0, %v1387_v34 }
 0x192   :  { %v228_v35 = vpop.f32.mrb[4].mxu1 }
 0x193   :  { %v1718_v36 = vpop.f32.mrb[5].mxu1 }
 0x196   :  { %v890_v37 = vpop.f32.mrb[4].mxu0 }
 0x197   :  { %v1837_v38 = vpop.f32.mrb[5].mxu0 }
 0x19e   :  { %v316_v39 = vpop.f32.mrb[6].mxu1 }
 0x19f   :  { %v1735_v40 = vpop.f32.mrb[7].mxu1 }
 0x1a2   :  { %v988_v41 = vpop.f32.mrb[6].mxu0 }
 0x1a3   :  { %v1854_v42 = vpop.f32.mrb[7].mxu0 }
 0x1aa   :  { %v412_v43 = vpop.f32.mrb[8].mxu1 }
 0x1ab   :  { %v1752_v44 = vpop.f32.mrb[9].mxu1 }
 0x1ae   :  { %v1086_v45 = vpop.f32.mrb[8].mxu0 }
 0x1af   :  { %v1871_v46 = vpop.f32.mrb[9].mxu0 }
 0x1b6   :  { %v500_v47 = vpop.f32.mrb[10].mxu1 }
 0x1b7   :  { %v1769_v48 = vpop.f32.mrb[11].mxu1 }
 0x1ba   :  { %v1184_v49 = vpop.f32.mrb[10].mxu0 }
 0x1bb   :  { %v1888_v50 = vpop.f32.mrb[11].mxu0 }
 0x1c2   :  { %v596_v0 = vpop.f32.mrb[12].mxu1 }
 0x1c3   :  { %v1786_v51 = vpop.f32.mrb[13].mxu1 }
 0x1c6   :  { %v1282_v52 = vpop.f32.mrb[12].mxu0 }
 0x1c7   :  { %v1905_v53 = vpop.f32.mrb[13].mxu0 }
 0x1ce   :  { %v694_v54 = vpop.f32.mrb[14].mxu1 }
 0x1cf   :  { %v1803_v55 = vpop.f32.mrb[15].mxu1 }
 0x1d2   :  { %v782_v56 = vpop.f32.mrb[0].mxu1  ;;  %v1380_v57 = vpop.f32.mrb[14].mxu0 }
 0x1d3   :  { %v1814_v58 = vpop.f32.mrb[1].mxu1  ;;  %v1922_v59 = vpop.f32.mrb[15].mxu0 }
 0x1d6   :  { %v787_v60 = vpop.f32.mrb[2].mxu1  ;;  %v1468_v61 = vpop.f32.mrb[0].mxu0 }
 0x1d7   :  { %v2024_v62 = vadd.f32 %v1468_v61, %v782_v56  ;;  %v1817_v63 = vpop.f32.mrb[3].mxu1  ;;  %v1933_v1 = vpop.f32.mrb[1].mxu0 }
 0x1d9   :  { %v1602_v2 = vmul.f32 -1.442695, %v2024_v62 }
 0x1da   :  { %v1473_v3 = vpop.f32.mrb[2].mxu0  ;;  %v792_v4 = vpop.f32.mrb[16].mxu1 }
 0x1db   :  { %2163 = vpow2.f32 %v1602_v2  ;;  %v2025_v5 = vadd.f32 %v1473_v3, %v787_v60  ;;  %v1936_v6 = vpop.f32.mrb[3].mxu0  ;;  %v1820_v7 = vpop.f32.mrb[17].mxu1 }
 0x1dd   :  { %v1603_v8 = vmul.f32 -1.442695, %v2025_v5 }
 0x1de   :  { %v1478_v9 = vpop.f32.mrb[16].mxu0 }
 0x1df   :  { %2165 = vpow2.f32 %v1603_v8  ;;  %v1939_v10 = vpop.f32.mrb[17].mxu0 }
 0x1e5   :  { %v2164_v11 = vpop.eup %2163 }
 0x1e6   :  { %v1491_v12 = vadd.f32 1.0, %v2164_v11 }
 0x1e8   :  { %2167 = vrcp.f32 %v1491_v12 }
 0x1e9   :  { %v2166_v13 = vpop.eup %2165 }
 0x1ea   :  { %v1492_v14 = vadd.f32 1.0, %v2166_v13 }
 0x1ec   :  { %2169 = vrcp.f32 %v1492_v14 }
 0x1f2   :  { %v2168_v15 = vpop.eup %2167 }
 0x1f3   :  { %1497 = vst.msk [vmem:[#allocation9] sm:$0xff] %vm40_vm0, %v2168_v15 }
 0x1f6   :  { %v2170_v16 = vpop.eup %2169 }
 0x1f7   :  { %1498 = vst.msk [vmem:[#allocation9 + $0x8] sm:$0xff] %vm40_vm0, %v2170_v16 }
 0x1f8   :  { %2226 = shalt.err (!%p2223_p8)
}
 0x1f9   :  { %s2227_s17 = scalar_lea.hbm %s2590_s2, 256 }
 0x1fa   :  { %p2228_p9 = scmp.ne.s32.totalorder %s2590_s2, %s2227_s17  ;;  %p2231_p10 = scmp.lt.u32.totalorder %s2227_s17, %s2590_s2 }
 0x1fc   :  { %p2233_p11 = pnand %p2231_p10, %p2228_p9 }
 0x1fe   :  { %2236 = shalt.err (!%p2233_p11)
}
 0x1ff   :  { %1510 = dma.vmem_to_hbm [thread:$0]  %s1505_s13, 256, %s2590_s2, [#allocation6], %s2324_s19, %s2324_s19, %s2325_s20  }
 0x200   :  { %2281 = dma.done.wait [#allocation6], 256  }
 0x201   :  { %2282 = vsyncadd [#allocation6], 4294967040 }
 0x202   :  { %1514 = vsyncpa [#allocation5], 1 }
 0x203   :  { %1515 = vsyncpa [#allocation8], 1 }
 0x204   :  { %1516 = vsyncpa [#allocation6], 1 }

</bundles_post_ra>
